<compile_context>
chip_gen: v7x
topology: tpu7x:2x2x1
jax: 0.10.0
libtpu: 0.0.40
codegen_flags: <defaults>
</compile_context>

<pallas_src>
import jax
import jax.numpy as jnp
from jax.experimental import pallas as pl
from jax.experimental.pallas import tpu as pltpu


def _round_up(x, m):
    return ((x + m - 1) // m) * m


def _vmem_capacity_bytes():
    try:
        return int(pltpu.get_tpu_info().vmem_capacity_bytes)
    except Exception:
        return 64 * 1024 * 1024            # v7x-safe fallback


# ---------------------------------------------------------------------------
# Path A: VMEM-resident tables, one-hot MXU gather (no per-row DMAs).
# ---------------------------------------------------------------------------
def _make_fast_kernel(TB, N, Vp, Dp, B_valid):
    def kernel(pu_ref, pv_ref, nv_ref,        # per-tile VMEM int32 index blocks
               uw_ref, vw_ref,                # whole tables, VMEM-resident
               out_ref):                      # (1, 8, 128) per-tile partials
        tile = pl.program_id(0)
        base = tile * TB

        uw = uw_ref[...]                                        # [Vp, Dp]
        vw = vw_ref[...]                                        # [Vp, Dp]
        iota_v = jax.lax.broadcasted_iota(jnp.int32, (TB, Vp), 1)

        # One-hot gathers on the MXU (no dynamic indexing, no DMA descriptors).
        oh_u = (pu_ref[...] == iota_v).astype(jnp.float32)      # [TB, Vp]
        oh_v = (pv_ref[...] == iota_v).astype(jnp.float32)
        emb_u = jnp.dot(oh_u, uw, preferred_element_type=jnp.float32)  # [TB, Dp]
        emb_v = jnp.dot(oh_v, vw, preferred_element_type=jnp.float32)

        # Mask padded tail rows (they gather row 0 but contribute 0 loss).
        rows = base + jax.lax.broadcasted_iota(jnp.int32, (TB, 1), 0)
        valid = (rows < B_valid).astype(jnp.float32)

        pos_score = jnp.clip(jnp.sum(emb_u * emb_v, axis=1, keepdims=True),
                             -6.0, 6.0)
        pos_partial = jnp.sum(jnp.log1p(jnp.exp(-pos_score)) * valid)

        nv = nv_ref[...]                                        # [TB, N]
        neg_loss = jnp.zeros((TB, 1), jnp.float32)
        for n in range(N):                                      # small static unroll
            oh_n = (nv[:, n:n + 1] == iota_v).astype(jnp.float32)
            emb_n = jnp.dot(oh_n, vw, preferred_element_type=jnp.float32)
            s = jnp.clip(jnp.sum(emb_n * emb_u, axis=1, keepdims=True), -6.0, 6.0)
            neg_loss = neg_loss + jnp.log1p(jnp.exp(s))         # -logsigmoid(-x)
        neg_partial = jnp.sum(neg_loss * valid)

        # Lane-dense per-tile partials: element (0,0) = pos, (0,1) = neg.
        sub = jax.lax.broadcasted_iota(jnp.int32, (8, 128), 0)
        lane = jax.lax.broadcasted_iota(jnp.int32, (8, 128), 1)
        pos_mask = ((sub == 0) & (lane == 0)).astype(jnp.float32)
        neg_mask = ((sub == 0) & (lane == 1)).astype(jnp.float32)
        out_ref[0] = pos_partial * pos_mask + neg_partial * neg_mask

    return kernel


def _fast_forward(u_w, v_w, pos_u, pos_v, neg_v, TB, vmem_limit):
    Vp, Dp = u_w.shape
    B = int(pos_u.shape[0])
    N = int(neg_v.shape[1])
    num_tiles = (B + TB - 1) // TB
    B_pad = num_tiles * TB

    pu = jnp.pad(pos_u.astype(jnp.int32), (0, B_pad - B)).reshape(B_pad, 1)
    pv = jnp.pad(pos_v.astype(jnp.int32), (0, B_pad - B)).reshape(B_pad, 1)
    nv = jnp.pad(neg_v.astype(jnp.int32), ((0, B_pad - B), (0, 0)))

    kernel = _make_fast_kernel(TB, N, Vp, Dp, B)
    partials = pl.pallas_call(
        kernel,
        out_shape=jax.ShapeDtypeStruct((num_tiles, 8, 128), jnp.float32),
        grid=(num_tiles,),
        in_specs=[
            pl.BlockSpec((TB, 1), lambda i: (i, 0)),          # pos_u indices
            pl.BlockSpec((TB, 1), lambda i: (i, 0)),          # pos_v indices
            pl.BlockSpec((TB, N), lambda i: (i, 0)),          # neg_v indices
            pl.BlockSpec((Vp, Dp), lambda i: (0, 0)),         # u table (resident)
            pl.BlockSpec((Vp, Dp), lambda i: (0, 0)),         # v table (resident)
        ],
        out_specs=pl.BlockSpec((1, 8, 128), lambda i: (i, 0, 0)),
        compiler_params=pltpu.CompilerParams(
            dimension_semantics=("parallel",),
            vmem_limit_bytes=vmem_limit),
    )(pu, pv, nv, u_w, v_w)

    return jnp.sum(partials[:, 0, 0]), jnp.sum(partials[:, 0, 1])


# ---------------------------------------------------------------------------
# Path B: HBM tables + fused per-row DMA gather (large vocabularies).
# ---------------------------------------------------------------------------
def _make_dma_kernel(TB, N, Dp, B_valid):
    def kernel(pos_u_ref, pos_v_ref, neg_v_ref,   # SMEM scalar-prefetch (int32)
               u_w_ref, v_w_ref,                  # HBM weight tables (pl.ANY)
               out_ref,                           # (1, 8, 128) per-tile partials
               emb_u, emb_v, emb_nv,              # VMEM gather scratch
               sem_uv, sem_neg):                  # shared DMA sems: (2,), (N,)
        tile = pl.program_id(0)
        base = tile * TB

        # ---- issue positive gathers: all TB rows share one sem per table ----
        @pl.loop(0, TB)
        def _(r):
            iu = pos_u_ref[base + r]
            pltpu.make_async_copy(u_w_ref.at[iu], emb_u.at[r], sem_uv.at[0]).start()
            iv = pos_v_ref[base + r]
            pltpu.make_async_copy(v_w_ref.at[iv], emb_v.at[r], sem_uv.at[1]).start()

        # ---- issue negative gathers: static unroll over n (no int divide),
        #      one shared sem per negative slot, N-major layout in emb_nv ------
        for n in range(N):
            @pl.loop(0, TB)
            def _(b, n=n):
                idx = neg_v_ref[(base + b) * N + n]     # neg_v row-major [B, N]
                pltpu.make_async_copy(v_w_ref.at[idx], emb_nv.at[n * TB + b],
                                      sem_neg.at[n]).start()

        rows = base + jax.lax.broadcasted_iota(jnp.int32, (TB, 1), 0)
        valid = (rows < B_valid).astype(jnp.float32)

        # ---- positives: ONE aggregate wait per table (covers all TB copies) --
        pltpu.make_async_copy(emb_u, emb_u, sem_uv.at[0]).wait()
        pltpu.make_async_copy(emb_v, emb_v, sem_uv.at[1]).wait()

        u = emb_u[...]                                          # [TB, Dp]
        v = emb_v[...]                                          # [TB, Dp]
        pos_score = jnp.clip(jnp.sum(u * v, axis=1, keepdims=True), -6.0, 6.0)
        pos_partial = jnp.sum(jnp.log1p(jnp.exp(-pos_score)) * valid)

        # ---- negatives: wait slice n right before using it, so gathers for
        #      n+1..N-1 stay in flight during this slice's compute -------------
        neg_loss = jnp.zeros((TB, 1), jnp.float32)
        for n in range(N):
            sl = emb_nv.at[pl.ds(n * TB, TB)]
            pltpu.make_async_copy(sl, sl, sem_neg.at[n]).wait()  # aggregate wait
            nv_n = emb_nv[pl.ds(n * TB, TB), :]                  # [TB, Dp] static slice
            s = jnp.clip(jnp.sum(nv_n * u, axis=1, keepdims=True), -6.0, 6.0)
            neg_loss = neg_loss + jnp.log1p(jnp.exp(s))
        neg_partial = jnp.sum(neg_loss * valid)

        sub = jax.lax.broadcasted_iota(jnp.int32, (8, 128), 0)
        lane = jax.lax.broadcasted_iota(jnp.int32, (8, 128), 1)
        pos_mask = ((sub == 0) & (lane == 0)).astype(jnp.float32)
        neg_mask = ((sub == 0) & (lane == 1)).astype(jnp.float32)
        out_ref[0] = pos_partial * pos_mask + neg_partial * neg_mask

    return kernel


def _dma_forward_chunk(u_w, v_w, pos_u, pos_v, neg_v, TB, vmem_limit):
    V, Dp = u_w.shape
    B = int(pos_u.shape[0])
    N = int(neg_v.shape[1])
    num_tiles = (B + TB - 1) // TB
    B_pad = num_tiles * TB

    pu = jnp.pad(pos_u.astype(jnp.int32), (0, B_pad - B))
    pv = jnp.pad(pos_v.astype(jnp.int32), (0, B_pad - B))
    nv = jnp.pad(neg_v.astype(jnp.int32).reshape(-1), (0, (B_pad - B) * N))

    kernel = _make_dma_kernel(TB, N, Dp, B)
    partials = pl.pallas_call(
        kernel,
        out_shape=jax.ShapeDtypeStruct((num_tiles, 8, 128), jnp.float32),
        grid_spec=pltpu.PrefetchScalarGridSpec(
            num_scalar_prefetch=3,
            grid=(num_tiles,),
            in_specs=[pl.BlockSpec(memory_space=pl.ANY),    # u_embeddings.weight
                      pl.BlockSpec(memory_space=pl.ANY)],   # v_embeddings.weight
            out_specs=pl.BlockSpec((1, 8, 128), lambda i, *_: (i, 0, 0)),
            scratch_shapes=[
                pltpu.VMEM((TB, Dp), jnp.float32),          # gathered emb_u
                pltpu.VMEM((TB, Dp), jnp.float32),          # gathered emb_v
                pltpu.VMEM((TB * N, Dp), jnp.float32),      # gathered emb_neg_v
                pltpu.SemaphoreType.DMA((2,)),              # shared pos_u / pos_v sems
                pltpu.SemaphoreType.DMA((N,)),              # one shared sem per negative
            ]),
        compiler_params=pltpu.CompilerParams(
            dimension_semantics=("parallel",),
            vmem_limit_bytes=vmem_limit),
    )(pu, pv, nv, u_w, v_w)

    return jnp.sum(partials[:, 0, 0]), jnp.sum(partials[:, 0, 1])


# ---------------------------------------------------------------------------
# Public wrapper: dispatch + tiling decisions.
# ---------------------------------------------------------------------------
def skipgram_forward(u_weight, v_weight, pos_u, pos_v, neg_v, *,
                     batch_tile=None, force_dma_gather=False,
                     max_pairs_per_call=4096):
    """SkipGram forward. Returns (sum(pos_loss), sum(neg_loss))."""
    V, D = u_weight.shape
    B = int(pos_u.shape[0])
    N = int(neg_v.shape[1])

    Dp = _round_up(D, 128)                     # lane-dense embedding dim
    capacity = _vmem_capacity_bytes()
    scratch_budget = capacity // 4             # 16 MiB on v7x, 32 MiB on v5e/v6e
    vmem_limit = min((capacity * 3) // 4, 96 * 1024 * 1024)

    # TODO(synk): in a real training loop keep the tables stored pre-padded (and
    # optionally bf16 for 2x gather bandwidth, upcast to f32 right after the
    # gather; on v5e upcast immediately, its VPU has no bf16) so this pad/cast
    # is not re-materialized every step.
    u_w = u_weight.astype(jnp.float32)
    v_w = v_weight.astype(jnp.float32)
    if Dp != D:
        u_w = jnp.pad(u_w, ((0, 0), (0, Dp - D)))
        v_w = jnp.pad(v_w, ((0, 0), (0, Dp - D)))

    table_bytes = 2 * V * Dp * 4
    use_fast = (not force_dma_gather) and table_bytes <= 4 * 1024 * 1024 and V <= 8192

    if use_fast:
        # -------- path A: tables resident in VMEM, one-hot MXU gather --------
        Vp = _round_up(V, 8)
        if Vp != V:
            u_w = jnp.pad(u_w, ((0, Vp - V), (0, 0)))
            v_w = jnp.pad(v_w, ((0, Vp - V), (0, 0)))
        if batch_tile is None:
            avail = max(scratch_budget - 2 * table_bytes, 2 * 1024 * 1024)
            TB = avail // ((2 * Vp + 6 * Dp) * 4)
            TB = max(8, min(512, (TB // 8) * 8, _round_up(B, 8)))
        else:
            TB = max(8, _round_up(int(batch_tile), 8))
        return _fast_forward(u_w, v_w, pos_u, pos_v, neg_v, TB, vmem_limit)

    # ------------ path B: large vocab, fused per-row DMA gather --------------
    if batch_tile is None:
        per_row = (2 + N) * Dp * 4             # single-buffered gather scratch
        TB = scratch_budget // per_row
        TB = max(8, min(512, (TB // 8) * 8, _round_up(B, 8)))
    else:
        TB = max(8, _round_up(int(batch_tile), 8))

    # Chunk the batch so the scalar-prefetched index arrays stay bounded in SMEM.
    # TODO(synk): replace scalar prefetch with per-tile SMEM-blocked index inputs
    # to drop this chunking entirely.
    chunk = max(TB, (max_pairs_per_call // TB) * TB)
    pos_tot = jnp.float32(0.0)
    neg_tot = jnp.float32(0.0)
    for s in range(0, B, chunk):
        e = min(B, s + chunk)
        p, n = _dma_forward_chunk(u_w, v_w, pos_u[s:e], pos_v[s:e], neg_v[s:e],
                                  TB, vmem_limit)
        pos_tot = pos_tot + p
        neg_tot = neg_tot + n
    return pos_tot, neg_tot


def _reference_forward(u_weight, v_weight, pos_u, pos_v, neg_v):
    emb_u = u_weight[pos_u]
    emb_v = v_weight[pos_v]
    emb_neg_v = v_weight[neg_v]
    score = jnp.clip(jnp.sum(emb_u * emb_v, axis=1), -6.0, 6.0)
    score = -jax.nn.log_sigmoid(score)
    neg_score = jnp.clip(jnp.einsum("bnd,bd->bn", emb_neg_v, emb_u), -6.0, 6.0)
    neg_score = -jnp.sum(jax.nn.log_sigmoid(-neg_score), axis=1)
    return jnp.sum(score), jnp.sum(neg_score)


if __name__ == "__main__":
    # Small, module-consistent shapes:
    #   emb_size (num nodes) = 64, emb_dimension = 32,
    #   batch of node pairs B = 20 (not a tile multiple -> exercises masking),
    #   negatives per pair N = 4.
    emb_size, emb_dim = 64, 32
    B, N = 20, 4

    key = jax.random.PRNGKey(0)
    k_u, k_v, k_pu, k_pv, k_nv = jax.random.split(key, 5)

    initrange = 1.0 / emb_dim
    # Module init: u ~ U(-1/D, 1/D); v = 0.  We init v with the same uniform
    # scheme so the kernel math is non-trivially exercised.
    u_weight = jax.random.uniform(k_u, (emb_size, emb_dim), jnp.float32,
                                  -initrange, initrange)
    v_weight = jax.random.uniform(k_v, (emb_size, emb_dim), jnp.float32,
                                  -initrange, initrange)

    pos_u = jax.random.randint(k_pu, (B,), 0, emb_size, dtype=jnp.int32)
    pos_v = jax.random.randint(k_pv, (B,), 0, emb_size, dtype=jnp.int32)
    neg_v = jax.random.randint(k_nv, (B, N), 0, emb_size, dtype=jnp.int32)

    ref_pos, ref_neg = _reference_forward(u_weight, v_weight, pos_u, pos_v, neg_v)

    # Path A (what the demo vocab uses): batch_tile=8 -> 3 grid tiles; the last
    # tile has 4 padded (masked) rows.
    pos_a, neg_a = skipgram_forward(u_weight, v_weight, pos_u, pos_v, neg_v,
                                    batch_tile=8)
    jax.block_until_ready((pos_a, neg_a))
    assert jnp.allclose(pos_a, ref_pos, rtol=1e-5, atol=1e-5), (pos_a, ref_pos)
    assert jnp.allclose(neg_a, ref_neg, rtol=1e-5, atol=1e-5), (neg_a, ref_neg)

    # Path B (large-vocab DMA-gather path), forced here at small shapes to
    # exercise the shared-semaphore / coalesced-wait gather pipeline.
    pos_b, neg_b = skipgram_forward(u_weight, v_weight, pos_u, pos_v, neg_v,
                                    batch_tile=8, force_dma_gather=True)
    jax.block_until_ready((pos_b, neg_b))
    assert jnp.allclose(pos_b, ref_pos, rtol=1e-5, atol=1e-5), (pos_b, ref_pos)
    assert jnp.allclose(neg_b, ref_neg, rtol=1e-5, atol=1e-5), (neg_b, ref_neg)

    print("KERNEL_OK")
</pallas_src>

<mosaic_0001>
module attributes {stable_mosaic.version = 11 : i64} {
  func.func @kernel(%arg0: i32, %arg1: memref<8x1xi32, #tpu.memory_space<vmem>>, %arg2: memref<8x1xi32, #tpu.memory_space<vmem>>, %arg3: memref<8x4xi32, #tpu.memory_space<vmem>>, %arg4: memref<64x128xf32, #tpu.memory_space<vmem>>, %arg5: memref<64x128xf32, #tpu.memory_space<vmem>>, %arg6: memref<1x8x128xf32, #tpu.memory_space<vmem>>) attributes {dimension_semantics = [#tpu.dimension_semantics<parallel>], iteration_bounds = array<i64: 3>, scalar_prefetch = 0 : i64, scratch_operands = 0 : i64, tpu.core_type = #tpu.core_type<tc>, window_params = [{transform_indices = @transform_0, window_bounds = array<i64: 8, 1>}, {transform_indices = @transform_1, window_bounds = array<i64: 8, 1>}, {transform_indices = @transform_2, window_bounds = array<i64: 8, 4>}, {pipeline_mode = #tpu.pipeline_mode<synchronous>, transform_indices = @transform_3, window_bounds = array<i64: 64, 128>}, {pipeline_mode = #tpu.pipeline_mode<synchronous>, transform_indices = @transform_4, window_bounds = array<i64: 64, 128>}, {transform_indices = @transform_5, window_bounds = array<i64: 1, 8, 128>}]} {
    %c8_i32 = arith.constant 8 : i32
    %0 = arith.muli %arg0, %c8_i32 : i32
    %c0 = arith.constant 0 : index
    %c0_0 = arith.constant 0 : index
    %1 = vector.load %arg4[%c0, %c0_0] : memref<64x128xf32, #tpu.memory_space<vmem>>, vector<64x128xf32>
    %c0_1 = arith.constant 0 : index
    %c0_2 = arith.constant 0 : index
    %2 = vector.load %arg5[%c0_1, %c0_2] : memref<64x128xf32, #tpu.memory_space<vmem>>, vector<64x128xf32>
    %3 = tpu.iota {dimensions = array<i32: 1>} : vector<8x64xi32>
    %c0_3 = arith.constant 0 : index
    %c0_4 = arith.constant 0 : index
    %4 = vector.load %arg1[%c0_3, %c0_4] : memref<8x1xi32, #tpu.memory_space<vmem>>, vector<8x1xi32>
    %5 = vector.broadcast %4 : vector<8x1xi32> to vector<8x64xi32>
    %6 = arith.cmpi eq, %5, %3 : vector<8x64xi32>
    %7 = arith.extui %6 : vector<8x64xi1> to vector<8x64xi32>
    %8 = arith.sitofp %7 : vector<8x64xi32> to vector<8x64xf32>
    %c0_5 = arith.constant 0 : index
    %c0_6 = arith.constant 0 : index
    %9 = vector.load %arg2[%c0_5, %c0_6] : memref<8x1xi32, #tpu.memory_space<vmem>>, vector<8x1xi32>
    %10 = vector.broadcast %9 : vector<8x1xi32> to vector<8x64xi32>
    %11 = arith.cmpi eq, %10, %3 : vector<8x64xi32>
    %12 = arith.extui %11 : vector<8x64xi1> to vector<8x64xi32>
    %13 = arith.sitofp %12 : vector<8x64xi32> to vector<8x64xf32>
    %cst = arith.constant dense<0.000000e+00> : vector<8x128xf32>
    %14 = tpu.matmul %8, %1, %cst {dimension_numbers = #tpu.dot_dimension_numbers<[1], [0], [0], [1], [0, 0, 1, 1], [], []>} : vector<8x64xf32>, vector<64x128xf32>, vector<8x128xf32> -> vector<8x128xf32>
    %cst_7 = arith.constant dense<0.000000e+00> : vector<8x128xf32>
    %15 = tpu.matmul %13, %2, %cst_7 {dimension_numbers = #tpu.dot_dimension_numbers<[1], [0], [0], [1], [0, 0, 1, 1], [], []>} : vector<8x64xf32>, vector<64x128xf32>, vector<8x128xf32> -> vector<8x128xf32>
    %16 = tpu.iota {dimensions = array<i32: 0>} : vector<8x1xi32>
    %17 = vector.broadcast %0 : i32 to vector<8x1xi32>
    %18 = arith.addi %17, %16 : vector<8x1xi32>
    %c20_i32 = arith.constant 20 : i32
    %19 = vector.broadcast %c20_i32 : i32 to vector<8x1xi32>
    %20 = arith.cmpi slt, %18, %19 : vector<8x1xi32>
    %21 = arith.extui %20 : vector<8x1xi1> to vector<8x1xi32>
    %22 = arith.sitofp %21 : vector<8x1xi32> to vector<8x1xf32>
    %23 = arith.mulf %14, %15 : vector<8x128xf32>
    %cst_8 = arith.constant dense<0.000000e+00> : vector<8xf32>
    %24 = vector.multi_reduction <add>, %23, %cst_8 [1] : vector<8x128xf32> to vector<8xf32>
    %25 = vector.shape_cast %24 : vector<8xf32> to vector<8x1xf32>
    %cst_9 = arith.constant -6.000000e+00 : f32
    %cst_10 = arith.constant 6.000000e+00 : f32
    %26 = vector.broadcast %cst_9 : f32 to vector<8x1xf32>
    %27 = arith.maximumf %26, %25 : vector<8x1xf32>
    %28 = vector.broadcast %cst_10 : f32 to vector<8x1xf32>
    %29 = arith.minimumf %28, %27 : vector<8x1xf32>
    %cst_11 = arith.constant 0.000000e+00 : f32
    %30 = vector.broadcast %cst_11 : f32 to vector<8x1xf32>
    %31 = arith.subf %30, %29 : vector<8x1xf32>
    %32 = math.exp %31 : vector<8x1xf32>
    %33 = math.log1p %32 : vector<8x1xf32>
    %34 = arith.mulf %33, %22 : vector<8x1xf32>
    %35 = vector.shape_cast %34 : vector<8x1xf32> to vector<1x8x1xf32>
    %cst_12 = arith.constant dense<0.000000e+00> : vector<1xf32>
    %36 = vector.multi_reduction <add>, %35, %cst_12 [1, 2] : vector<1x8x1xf32> to vector<1xf32>
    %37 = vector.shape_cast %36 : vector<1xf32> to vector<1x1x1xf32>
    %38 = vector.extract %37[0, 0, 0] : f32 from vector<1x1x1xf32>
    %c0_13 = arith.constant 0 : index
    %c0_14 = arith.constant 0 : index
    %39 = vector.load %arg3[%c0_13, %c0_14] : memref<8x4xi32, #tpu.memory_space<vmem>>, vector<8x4xi32>
    %cst_15 = arith.constant 0.000000e+00 : f32
    %40 = vector.broadcast %cst_15 : f32 to vector<8x1xf32>
    %41 = vector.extract_strided_slice %39 {offsets = [0, 0], sizes = [8, 1], strides = [1, 1]} : vector<8x4xi32> to vector<8x1xi32>
    %42 = vector.broadcast %41 : vector<8x1xi32> to vector<8x64xi32>
    %43 = arith.cmpi eq, %42, %3 : vector<8x64xi32>
    %44 = arith.extui %43 : vector<8x64xi1> to vector<8x64xi32>
    %45 = arith.sitofp %44 : vector<8x64xi32> to vector<8x64xf32>
    %cst_16 = arith.constant dense<0.000000e+00> : vector<8x128xf32>
    %46 = tpu.matmul %45, %2, %cst_16 {dimension_numbers = #tpu.dot_dimension_numbers<[1], [0], [0], [1], [0, 0, 1, 1], [], []>} : vector<8x64xf32>, vector<64x128xf32>, vector<8x128xf32> -> vector<8x128xf32>
    %47 = arith.mulf %46, %14 : vector<8x128xf32>
    %cst_17 = arith.constant dense<0.000000e+00> : vector<8xf32>
    %48 = vector.multi_reduction <add>, %47, %cst_17 [1] : vector<8x128xf32> to vector<8xf32>
    %49 = vector.shape_cast %48 : vector<8xf32> to vector<8x1xf32>
    %cst_18 = arith.constant -6.000000e+00 : f32
    %cst_19 = arith.constant 6.000000e+00 : f32
    %50 = vector.broadcast %cst_18 : f32 to vector<8x1xf32>
    %51 = arith.maximumf %50, %49 : vector<8x1xf32>
    %52 = vector.broadcast %cst_19 : f32 to vector<8x1xf32>
    %53 = arith.minimumf %52, %51 : vector<8x1xf32>
    %54 = math.exp %53 : vector<8x1xf32>
    %55 = math.log1p %54 : vector<8x1xf32>
    %56 = arith.addf %40, %55 : vector<8x1xf32>
    %57 = vector.extract_strided_slice %39 {offsets = [0, 1], sizes = [8, 1], strides = [1, 1]} : vector<8x4xi32> to vector<8x1xi32>
    %58 = vector.broadcast %57 : vector<8x1xi32> to vector<8x64xi32>
    %59 = arith.cmpi eq, %58, %3 : vector<8x64xi32>
    %60 = arith.extui %59 : vector<8x64xi1> to vector<8x64xi32>
    %61 = arith.sitofp %60 : vector<8x64xi32> to vector<8x64xf32>
    %cst_20 = arith.constant dense<0.000000e+00> : vector<8x128xf32>
    %62 = tpu.matmul %61, %2, %cst_20 {dimension_numbers = #tpu.dot_dimension_numbers<[1], [0], [0], [1], [0, 0, 1, 1], [], []>} : vector<8x64xf32>, vector<64x128xf32>, vector<8x128xf32> -> vector<8x128xf32>
    %63 = arith.mulf %62, %14 : vector<8x128xf32>
    %cst_21 = arith.constant dense<0.000000e+00> : vector<8xf32>
    %64 = vector.multi_reduction <add>, %63, %cst_21 [1] : vector<8x128xf32> to vector<8xf32>
    %65 = vector.shape_cast %64 : vector<8xf32> to vector<8x1xf32>
    %cst_22 = arith.constant -6.000000e+00 : f32
    %cst_23 = arith.constant 6.000000e+00 : f32
    %66 = vector.broadcast %cst_22 : f32 to vector<8x1xf32>
    %67 = arith.maximumf %66, %65 : vector<8x1xf32>
    %68 = vector.broadcast %cst_23 : f32 to vector<8x1xf32>
    %69 = arith.minimumf %68, %67 : vector<8x1xf32>
    %70 = math.exp %69 : vector<8x1xf32>
    %71 = math.log1p %70 : vector<8x1xf32>
    %72 = arith.addf %56, %71 : vector<8x1xf32>
    %73 = vector.extract_strided_slice %39 {offsets = [0, 2], sizes = [8, 1], strides = [1, 1]} : vector<8x4xi32> to vector<8x1xi32>
    %74 = vector.broadcast %73 : vector<8x1xi32> to vector<8x64xi32>
    %75 = arith.cmpi eq, %74, %3 : vector<8x64xi32>
    %76 = arith.extui %75 : vector<8x64xi1> to vector<8x64xi32>
    %77 = arith.sitofp %76 : vector<8x64xi32> to vector<8x64xf32>
    %cst_24 = arith.constant dense<0.000000e+00> : vector<8x128xf32>
    %78 = tpu.matmul %77, %2, %cst_24 {dimension_numbers = #tpu.dot_dimension_numbers<[1], [0], [0], [1], [0, 0, 1, 1], [], []>} : vector<8x64xf32>, vector<64x128xf32>, vector<8x128xf32> -> vector<8x128xf32>
    %79 = arith.mulf %78, %14 : vector<8x128xf32>
    %cst_25 = arith.constant dense<0.000000e+00> : vector<8xf32>
    %80 = vector.multi_reduction <add>, %79, %cst_25 [1] : vector<8x128xf32> to vector<8xf32>
    %81 = vector.shape_cast %80 : vector<8xf32> to vector<8x1xf32>
    %cst_26 = arith.constant -6.000000e+00 : f32
    %cst_27 = arith.constant 6.000000e+00 : f32
    %82 = vector.broadcast %cst_26 : f32 to vector<8x1xf32>
    %83 = arith.maximumf %82, %81 : vector<8x1xf32>
    %84 = vector.broadcast %cst_27 : f32 to vector<8x1xf32>
    %85 = arith.minimumf %84, %83 : vector<8x1xf32>
    %86 = math.exp %85 : vector<8x1xf32>
    %87 = math.log1p %86 : vector<8x1xf32>
    %88 = arith.addf %72, %87 : vector<8x1xf32>
    %89 = vector.extract_strided_slice %39 {offsets = [0, 3], sizes = [8, 1], strides = [1, 1]} : vector<8x4xi32> to vector<8x1xi32>
    %90 = vector.broadcast %89 : vector<8x1xi32> to vector<8x64xi32>
    %91 = arith.cmpi eq, %90, %3 : vector<8x64xi32>
    %92 = arith.extui %91 : vector<8x64xi1> to vector<8x64xi32>
    %93 = arith.sitofp %92 : vector<8x64xi32> to vector<8x64xf32>
    %cst_28 = arith.constant dense<0.000000e+00> : vector<8x128xf32>
    %94 = tpu.matmul %93, %2, %cst_28 {dimension_numbers = #tpu.dot_dimension_numbers<[1], [0], [0], [1], [0, 0, 1, 1], [], []>} : vector<8x64xf32>, vector<64x128xf32>, vector<8x128xf32> -> vector<8x128xf32>
    %95 = arith.mulf %94, %14 : vector<8x128xf32>
    %cst_29 = arith.constant dense<0.000000e+00> : vector<8xf32>
    %96 = vector.multi_reduction <add>, %95, %cst_29 [1] : vector<8x128xf32> to vector<8xf32>
    %97 = vector.shape_cast %96 : vector<8xf32> to vector<8x1xf32>
    %cst_30 = arith.constant -6.000000e+00 : f32
    %cst_31 = arith.constant 6.000000e+00 : f32
    %98 = vector.broadcast %cst_30 : f32 to vector<8x1xf32>
    %99 = arith.maximumf %98, %97 : vector<8x1xf32>
    %100 = vector.broadcast %cst_31 : f32 to vector<8x1xf32>
    %101 = arith.minimumf %100, %99 : vector<8x1xf32>
    %102 = math.exp %101 : vector<8x1xf32>
    %103 = math.log1p %102 : vector<8x1xf32>
    %104 = arith.addf %88, %103 : vector<8x1xf32>
    %105 = arith.mulf %104, %22 : vector<8x1xf32>
    %106 = vector.shape_cast %105 : vector<8x1xf32> to vector<1x8x1xf32>
    %cst_32 = arith.constant dense<0.000000e+00> : vector<1xf32>
    %107 = vector.multi_reduction <add>, %106, %cst_32 [1, 2] : vector<1x8x1xf32> to vector<1xf32>
    %108 = vector.shape_cast %107 : vector<1xf32> to vector<1x1x1xf32>
    %109 = vector.extract %108[0, 0, 0] : f32 from vector<1x1x1xf32>
    %110 = tpu.iota {dimensions = array<i32: 0>} : vector<8x128xi32>
    %111 = tpu.iota {dimensions = array<i32: 1>} : vector<8x128xi32>
    %c0_i32 = arith.constant 0 : i32
    %112 = vector.broadcast %c0_i32 : i32 to vector<8x128xi32>
    %113 = arith.cmpi eq, %110, %112 : vector<8x128xi32>
    %c0_i32_33 = arith.constant 0 : i32
    %114 = vector.broadcast %c0_i32_33 : i32 to vector<8x128xi32>
    %115 = arith.cmpi eq, %111, %114 : vector<8x128xi32>
    %116 = arith.andi %113, %115 : vector<8x128xi1>
    %117 = arith.extui %116 : vector<8x128xi1> to vector<8x128xi32>
    %118 = arith.sitofp %117 : vector<8x128xi32> to vector<8x128xf32>
    %c0_i32_34 = arith.constant 0 : i32
    %119 = vector.broadcast %c0_i32_34 : i32 to vector<8x128xi32>
    %120 = arith.cmpi eq, %110, %119 : vector<8x128xi32>
    %c1_i32 = arith.constant 1 : i32
    %121 = vector.broadcast %c1_i32 : i32 to vector<8x128xi32>
    %122 = arith.cmpi eq, %111, %121 : vector<8x128xi32>
    %123 = arith.andi %120, %122 : vector<8x128xi1>
    %124 = arith.extui %123 : vector<8x128xi1> to vector<8x128xi32>
    %125 = arith.sitofp %124 : vector<8x128xi32> to vector<8x128xf32>
    %126 = vector.broadcast %38 : f32 to vector<8x128xf32>
    %127 = arith.mulf %126, %118 : vector<8x128xf32>
    %128 = vector.broadcast %109 : f32 to vector<8x128xf32>
    %129 = arith.mulf %128, %125 : vector<8x128xf32>
    %130 = arith.addf %127, %129 : vector<8x128xf32>
    %c0_35 = arith.constant 0 : index
    %c0_36 = arith.constant 0 : index
    %c0_37 = arith.constant 0 : index
    %131 = vector.load %arg6[%c0_35, %c0_36, %c0_37] : memref<1x8x128xf32, #tpu.memory_space<vmem>>, vector<1x8x128xf32>
    %132 = vector.shape_cast %131 : vector<1x8x128xf32> to vector<8x128xf32>
    %133 = vector.shape_cast %130 : vector<8x128xf32> to vector<1x8x128xf32>
    tpu.vector_store %arg6[%c0_35, %c0_36, %c0_37], %133 {strides = array<i32>} : memref<1x8x128xf32, #tpu.memory_space<vmem>>, vector<1x8x128xf32>,
    return
  }
  func.func @transform_0(%arg0: i32) -> (i32, i32) {
    %c0_i32 = arith.constant 0 : i32
    %c0_i32_0 = arith.constant 0 : i32
    return %arg0, %c0_i32 : i32, i32
  }
  func.func @transform_1(%arg0: i32) -> (i32, i32) {
    %c0_i32 = arith.constant 0 : i32
    %c0_i32_0 = arith.constant 0 : i32
    return %arg0, %c0_i32 : i32, i32
  }
  func.func @transform_2(%arg0: i32) -> (i32, i32) {
    %c0_i32 = arith.constant 0 : i32
    %c0_i32_0 = arith.constant 0 : i32
    return %arg0, %c0_i32 : i32, i32
  }
  func.func @transform_3(%arg0: i32) -> (i32, i32) {
    %c0_i32 = arith.constant 0 : i32
    %c0_i32_0 = arith.constant 0 : i32
    %c0_i32_1 = arith.constant 0 : i32
    return %c0_i32, %c0_i32_0 : i32, i32
  }
  func.func @transform_4(%arg0: i32) -> (i32, i32) {
    %c0_i32 = arith.constant 0 : i32
    %c0_i32_0 = arith.constant 0 : i32
    %c0_i32_1 = arith.constant 0 : i32
    return %c0_i32, %c0_i32_0 : i32, i32
  }
  func.func @transform_5(%arg0: i32) -> (i32, i32, i32) {
    %c0_i32 = arith.constant 0 : i32
    %c0_i32_0 = arith.constant 0 : i32
    %c0_i32_1 = arith.constant 0 : i32
    return %arg0, %c0_i32, %c0_i32_0 : i32, i32, i32
  }
}

</mosaic_0001>

<bundles_post_ra>
// kernel: tpu_custom_call.1
= control target key start
LH: loop header
LB: loop body
LE: loop exit
PB: predicated region body
PF: predicated region fallthrough
CT: control target
= control target key end

     0   :  { %10 = vsyncpa [#allocation3], 0  ;;  %s1769_s0 = inlined_call_operand.vmem [shape: s32[24,1], index: 0, kind: input, shape index: {}]   ;;  %s1770_s1 = inlined_call_operand.vmem [shape: s32[24,1], index: 1, kind: input, shape index: {}]   ;;  %s1771_s2 = inlined_call_operand.vmem [shape: s32[24,4], index: 2, kind: input, shape index: {}]   ;;  %s1772_s3 = inlined_call_operand.vmem [shape: f32[64,128], index: 3, kind: input, shape index: {}]   ;;  %s1773_s4 = inlined_call_operand.hbm [shape: f32[64,128], index: 4, kind: input, shape index: {}]   ;;  %s1774_s5 = inlined_call_operand.hbm [shape: f32[3,8,128], index: 5, kind: output, shape index: {}]  }
   0x1   :  { %11 = vsyncpa [#allocation4], 0 }
   0x2   :  { %13 = vsyncpa [#allocation4 + $0x1], 0  ;;  %s1506_s18 = smov 0   ;;  %s1508_s19 = smov 0  }
   0x3   :  { %s1510_s20 = smov 0   ;;  %s1512_s21 = smov 0  }
   0x4 LB: > { %s1527_s22 = sadd.s32 4294967295, %s1463_s21   ;;  %s1005_s23 = sadd.s32 4294967294, %s1463_s21   ;;  %s1463_s21 = sphi %s1512_s21, %s1790_s21   ;;  %s1459_s20 = sphi %s1510_s20, %s1789_s20   ;;  %s1455_s19 = sphi %s1508_s19, %s1788_s19   ;;  %s1451_s18 = sphi %s1506_s18, %s1787_s18  }
   0x5   : > { %s1531_s24 = sadd.s32 1, %s1463_s21   ;;  %s146_s25 = sadd.s32 1, %s1459_s20 }
   0x6   : > { %s143_s26 = ssub.s32 %s1463_s21, %s1531_s24  ;;  %p156_p0 = scmp.ne.s32.totalorder %s1459_s20, %s1455_s19 }
   0x7   : > { %p144_p1 = scmp.eq.s32.totalorder %s143_s26, 0  ;;  %p157_p2 = scmp.eq.s32.totalorder %s1527_s22, 2 }
   0x8   : > { %p162_p3 = scmp.ne.s32.totalorder %s1455_s19, %s1451_s18  ;;  %p163_p4 = scmp.eq.s32.totalorder %s1005_s23, 2 }
   0x9   : > { %s1542_s27 = scalar_select %p144_p1, %s1459_s20, %s146_s25  }
   0xa   : > { %p1544_p5 = por %p157_p2, %p156_p0  ;;  %p1548_p6 = por %p163_p4, %p162_p3 }
   0xb   : > { %p1006_p7 = scmp.ge.s32.totalorder %s1463_s21, 1  ;;  %p170_p8 = scmp.lt.s32.totalorder %s1463_s21, 4 }
   0xc   : > { %s1778_s28 = scalar_select %p1544_p5, 1, 0 }
   0xd   : > { %s1779_s29 = scalar_select %p1548_p6, 1, 0 }
   0xe   : > { %p1775_p9 = scmp.eq.s32.totalorder %s1527_s22, 0  ;;  %p1555_p10 = pnand %p1006_p7, %p170_p8 }
   0xf   : > { %s1465_s6 = smov [#allocation2]   ;;  %s1369_s11 = scalar_lea.hbm %s1773_s4, 1024 }
  0x10   : > { %s1780_s30 = scalar_select %p1555_p10, 1, 0 }
  0x11   : > { %s185_s7 = sshll.u32 %s1465_s6, 4  ;;  %p1290_p11 = pneg %p1555_p10  ;;  %s186_s7 = int_to_ptr.vmem [resolvable:$true] %s185_s7 }
  0x12   : > { %p1370_p13 = scmp.ne.s32.totalorder %s1773_s4, %s1369_s11  ;;  %p1376_p3 = scmp.lt.u32.totalorder %s1369_s11, %s1773_s4 }
  0x13   : > { %p1563_p12 = pnand %p1775_p9, %p1290_p11 }
  0x15   : > { %p1371_p0 = pneg %p1563_p12 }
  0x17   : > { %p1372_p1 = pnand %p1371_p0, %p1370_p13 }
  0x19   : > { %p1373_p2 = pneg %p1372_p1 }
  0x1b   : > { %p1378_p4 = pnand %p1376_p3, %p1373_p2 }
  0x1d   : > { %1381 = shalt.err (!%p1378_p4)
}
  0x1e   : > { %s1382_s16 = scalar_lea.vmem %s186_s7, 1024  ;;  %p1390_p9 = scmp.lt.s32.totalorder %s186_s7, %s186_s7 }
  0x1f   : > { %p1383_p7 = scmp.ne.s32.totalorder %s186_s7, %s1382_s16  ;;  %p1391_p6 = scmp.lt.s32.totalorder %s1382_s16, %s1382_s16 }
  0x21   : > { %p1385_p8 = pnand %p1383_p7, %p1371_p0  ;;  %p1392_p5 = por %p1391_p6, %p1390_p9 }
  0x23   : > { %p1386_p11 = pneg %p1385_p8 }
  0x25   : > { %p1393_p10 = pnand %p1392_p5, %p1386_p11 }
  0x27   : > { %1396 = shalt.err (!%p1393_p10)
}
  0x28   : > { %s1466_s17 = smov 128   ;;  %s1467_s23 = smov 8  }
  0x29   : > { %1293 = dma.hbm_to_vmem [thread:$0]  (!%p1563_p12), %s1773_s4, 1024, %s186_s7, [#allocation3], %s1466_s17, %s1466_s17, %s1467_s23  }
  0x2a   : > { %p1782_p13 = scmp.ne.s32.totalorder %s1780_s30, 0 }
  0x2b   : > { %p1783_p1 = scmp.eq.s32.totalorder (!%p1782_p13), %s1527_s22, 0 }
  0x2c   : > { %222 = sbr.rel (%p1782_p13) target bundleno = 840 (0x348), region = 40 }
  0x33   : > { %1442 = dma.done.wait (%p1783_p1), [#allocation3], 1024   ;;  %p1784_p0 = pmov %p1783_p1 }
  0x34   : > { %p257_p5 = scmp.lt.s32.totalorder %s1527_s22, 2  ;;  %v1468_v0 = vmov 0   ;;  %v1469_v1 = vmov 0.0|0.0   ;;  %v270_v5 = vld [vmem:[%s1772_s3] sm:$0xff]  ;;  %v271_v6 = vld [vmem:[%s1772_s3 + $0x8] sm:$0xff]  ;;  %v272_v7 = vld [vmem:[%s1772_s3 + $0x10] sm:$0xff]  ;;  %v286_v33 = vlaneseq }
  0x35   : > { %1444 = vsyncadd (%p1784_p0), [#allocation3], 4294966272  ;;  %1343 = vset.pattern.permute.xlu0 %v1468_v0  ;;  %1344 = vset.pattern.permute.xlu1 %v1468_v0  ;;  %v1209_v8 = vpack.c.bf16 %v271_v6, %v270_v5  ;;  %v273_v9 = vld [vmem:[%s1772_s3 + $0x18] sm:$0xff]  ;;  %v278_v10 = vld [vmem:[#allocation2] sm:$0xff]  ;;  %vm1470_vm0 = vmmov 0   ;;  %v1471_v12 = vmov 0.0  }
  0x36   : > { %s258_s6 = scalar_select %p257_p5, %s1527_s22, 2  ;;  %1208 = vmatprep.subr.bf16.mxu0 %v1469_v1  ;;  %1220 = vmatprep.subr.bf16.mxu1 %v1469_v1  ;;  %v279_v11 = vld [vmem:[#allocation2 + $0x8] sm:$0xff]  ;;  %v1212_v14 = vpack.c.bf16 %v273_v9, %v272_v7  ;;  %v280_v15 = vld [vmem:[#allocation2 + $0x10] sm:$0xff]  ;;  %v281_v16 = vld [vmem:[#allocation2 + $0x18] sm:$0xff]  ;;  %v1472_v17 = vmov 1   ;;  %v1473_v24 = vmov 2  }
  0x37   : > { %1110 = vmatprep.mubr.msk.f32.mxu0 %vm1470_vm0, %v1471_v12  ;;  %1129 = vmatprep.mubr.msk.f32.mxu1 %vm1470_vm0, %v1471_v12  ;;  %v1618_v13 = vpack.c.bf16 %v279_v11, %v278_v10  ;;  %v274_v18 = vld [vmem:[%s1772_s3 + $0x20] sm:$0xff]  ;;  %v275_v19 = vld [vmem:[%s1772_s3 + $0x28] sm:$0xff]  ;;  %v1628_v20 = vpack.c.bf16 %v281_v16, %v280_v15  ;;  %v282_v22 = vld [vmem:[#allocation2 + $0x20] sm:$0xff]  ;;  %v1474_v27 = vmov 3   ;;  %v1651_v34 = vand.u32 127, %v286_v33  ;;  %s1015_s16 = sshll.u32 %s1527_s22, 3 }
  0x38   : > { %s1012_s30 = sshll.u32 %s258_s6, 3  ;;  %1210 = vmatpush3.bf16.msra.mxu0 %v1209_v8  ;;  %v1215_v21 = vpack.c.bf16 %v275_v19, %v274_v18  ;;  %v283_v23 = vld [vmem:[#allocation2 + $0x28] sm:$0xff]  ;;  %v276_v25 = vld [vmem:[%s1772_s3 + $0x30] sm:$0xff]  ;;  %v284_v30 = vld [vmem:[#allocation2 + $0x30] sm:$0xff]  ;;  %vm302_vm1 = vcmask 523264   ;;  %vm474_vm10 = vcmask 7168  }
  0x39   : > { %s260_s9 = scalar_lea.vmem %s1769_s0, %s1012_s30  ;;  %s264_s12 = scalar_lea.vmem %s1770_s1, %s1012_s30  ;;  %1211 = vmatprep.subr.bf16.mxu0 %v1469_v1  ;;  %1222 = vmatpush3.bf16.msra.mxu1 %v1618_v13  ;;  %v277_v26 = vld [vmem:[%s1772_s3 + $0x38] sm:$0xff]  ;;  %v1639_v28 = vpack.c.bf16 %v283_v23, %v282_v22  ;;  %v285_v31 = vld [vmem:[#allocation2 + $0x38] sm:$0xff]  ;;  %v451_v23 = vstv %s1015_s16 }
  0x3a   : > { %s268_s15 = scalar_lea.vmem %s1771_s2, %s1012_s30  ;;  %v288_v2 = vld [vmem:[%s260_s9] sm:$0xff]  ;;  %1223 = vmatprep.subr.bf16.mxu1 %v1469_v1  ;;  %v1218_v29 = vpack.c.bf16 %v277_v26, %v276_v25  ;;  %v1644_v32 = vpack.c.bf16 %v285_v31, %v284_v30  ;;  %s254_s17 = sand.u32 1, %s1455_s19  }
  0x3b   : > { %v295_v3 = vld [vmem:[%s264_s12] sm:$0xff]  ;;  %290 = vperm.xlu0 %1343, %v288_v2   ;;  %s1011_s23 = sshll.u32 %s254_s17, 3  ;;  %s1037_s6 = sshll.u32 %s1527_s22, 7 }
  0x3c   : > { %v485_v4 = vld [vmem:[%s268_s15] sm:$0xff]  ;;  %1213 = vmatpush3.bf16.msra.mxu0 %v1212_v14  ;;  %s256_s7 = scalar_lea.vmem [#allocation5], %s1011_s23  ;;  %s1727_s10 = scalar_lea.hbm %s1774_s5, %s1037_s6 }
  0x3d   : > { %487 = vperm.xlu1 %1344, %v485_v4   ;;  %1214 = vmatprep.subr.bf16.mxu0 %v1469_v1  ;;  %s910_s30 = sshll.u32 %s256_s7, 4  ;;  %s897_s11 = scalar_lea.sflag [#allocation4], %s254_s17  ;;  %s1729_s30 = int_to_ptr.vmem [resolvable:$true] %s910_s30 }
  0x3e   : > { %1225 = vmatpush3.bf16.msra.mxu1 %v1628_v20  ;;  %s1397_s12 = scalar_lea.vmem %s1729_s30, 128  ;;  %p1785_p9 = scmp.ne.s32.totalorder %s1778_s28, 0 }
  0x3f   : > { %297 = vperm.xlu0 %1343, %v295_v3   ;;  %1226 = vmatprep.subr.bf16.mxu1 %v1469_v1  ;;  %p1398_p6 = scmp.ne.s32.totalorder %s1729_s30, %s1397_s12  ;;  %s1475_s22 = smov [#allocation5]  }
  0x40   : > { %1216 = vmatpush3.bf16.msra.mxu0 %v1215_v21  ;;  %v1711_v21 = vshrl.u32 %v286_v33, 7  ;;  %s1401_s13 = sshll.u32 %s1475_s22, 4  ;;  %s1402_s13 = int_to_ptr.vmem [resolvable:$false] %s1401_s13 }
  0x41   : > { %1345 = vset.pattern.permute.xlu1 %v1472_v17  ;;  %1217 = vmatprep.subr.bf16.mxu0 %v1469_v1  ;;  %p1399_p10 = pnand %p1398_p6, %p1785_p9  ;;  %s1403_s14 = scalar_lea.vmem %s1402_s13, 256 }
  0x42   : > { %583 = vperm.xlu1 %1345, %v485_v4   ;;  %1228 = vmatpush3.bf16.msra.mxu1 %v1639_v28  ;;  %v452_v26 = vadd.s32 %v451_v23, %v1711_v21  ;;  %vm881_vm15 = vcmp.eq.s32.totalorder %v1711_v21, 0  ;;  %p1404_p2 = scmp.lt.s32.totalorder %s1729_s30, %s1402_s13  ;;  %p1405_p3 = scmp.lt.s32.totalorder %s1403_s14, %s1397_s12 }
  0x43   : > { %1346 = vset.pattern.permute.xlu0 %v1473_v24  ;;  %1229 = vmatprep.subr.bf16.mxu1 %v1469_v1  ;;  %p1400_p12 = pneg %p1399_p10 }
  0x44   : > { %679 = vperm.xlu0 %1346, %v485_v4   ;;  %1219 = vmatpush3.bf16.msra.mxu0 %v1218_v29  ;;  %vm453_vm8 = vcmp.lt.s32.totalorder %v452_v26, 20  ;;  %p1406_p4 = por %p1405_p3, %p1404_p2 }
  0x45   : > { %1232 = vmatprep.subr.bf16.mxu0 %v1469_v1  ;;  %v1020_v33 = vsel %vm453_vm8, 1.0, %v1471_v12 }
  0x46   : > { %1347 = vset.pattern.permute.xlu1 %v1474_v27  ;;  %1231 = vmatpush3.bf16.msra.mxu1 %v1644_v32  ;;  %p1407_p7 = pnand %p1406_p4, %p1400_p12 }
  0x47   : > { %775 = vperm.xlu1 %1347, %v485_v4   ;;  %1244 = vmatprep.subr.bf16.mxu1 %v1469_v1 }
  0x48   : > { %1348 = vset.pattern.permute.xlu0 %v1474_v27 }
  0xba   : > { %v291_v35 = vpop.permute.xlu0 %290 }
  0xbb   : > { %vm292_vm2 = vcmp.eq.s32.totalorder %v291_v35, %v1651_v34 }
  0xbc   : > { %v1016_v36 = vsel %vm292_vm2, 1.0, %v1471_v12  ;;  %v488_v39 = vpop.permute.xlu1 %487 }
  0xbd   : > { %1111 = vmatmul.mubr.msk.f32.vlgmr.msra.gmra.mrb[0].mxu0 %vm302_vm1, %v1016_v36  ;;  %vm489_vm4 = vcmp.eq.s32.totalorder %v488_v39, %v1651_v34 }
  0xbe   : > { %1234 = vmatpush3.bf16.msra.mxu0 %v1618_v13  ;;  %v298_v37 = vpop.permute.xlu0 %297  ;;  %1148 = vmatprep.mubr.msk.f32.mxu0 %vm1470_vm0, %v1471_v12  ;;  %v1022_v41 = vsel %vm489_vm4, 1.0, %v1471_v12 }
  0xbf   : > { %vm299_vm3 = vcmp.eq.s32.totalorder %v298_v37, %v1651_v34  ;;  %1235 = vmatprep.subr.bf16.mxu0 %v1469_v1 }
  0xc0   : > { %v1017_v38 = vsel %vm299_vm3, 1.0, %v1471_v12 }
  0xc1   : > { %1130 = vmatmul.mubr.msk.f32.vlgmr.msra.gmra.mrb[0].mxu1 %vm302_vm1, %v1017_v38  ;;  %v584_v40 = vpop.permute.xlu1 %583 }
  0xc2   : > { %1237 = vmatpush3.bf16.msra.mxu0 %v1628_v20  ;;  %1246 = vmatpush3.bf16.msra.mxu1 %v1618_v13  ;;  %vm585_vm5 = vcmp.eq.s32.totalorder %v584_v40, %v1651_v34 }
  0xc3   : > { %1238 = vmatprep.subr.bf16.mxu0 %v1469_v1  ;;  %1247 = vmatprep.subr.bf16.mxu1 %v1469_v1  ;;  %v1025_v42 = vsel %vm585_vm5, 1.0, %v1471_v12  ;;  %v680_v43 = vpop.permute.xlu0 %679 }
  0xc4   : > { %1167 = vmatprep.mubr.msk.f32.mxu1 %vm1470_vm0, %v1471_v12  ;;  %vm681_vm6 = vcmp.eq.s32.totalorder %v680_v43, %v1651_v34 }
  0xc5   : > { %v1028_v45 = vsel %vm681_vm6, 1.0, %v1471_v12 }
  0xc6   : > { %1240 = vmatpush3.bf16.msra.mxu0 %v1639_v28  ;;  %1249 = vmatpush3.bf16.msra.mxu1 %v1628_v20  ;;  %v776_v44 = vpop.permute.xlu1 %775 }
  0xc7   : > { %1241 = vmatprep.subr.bf16.mxu0 %v1469_v1  ;;  %1250 = vmatprep.subr.bf16.mxu1 %v1469_v1  ;;  %vm777_vm7 = vcmp.eq.s32.totalorder %v776_v44, %v1651_v34 }
  0xc8   : > { %v1031_v46 = vsel %vm777_vm7, 1.0, %v1471_v12 }
  0xca   : > { %1243 = vmatpush3.bf16.msra.mxu0 %v1644_v32  ;;  %1252 = vmatpush3.bf16.msra.mxu1 %v1639_v28 }
  0xcb   : > { %1253 = vmatprep.subr.bf16.mxu1 %v1469_v1  ;;  %1256 = vmatprep.subr.bf16.mxu0 %v1469_v1 }
  0xcd   : > { %1149 = vmatmul.mubr.msk.f32.vlgmr.msra.gmra.mrb[2].mxu0 %vm302_vm1, %v1022_v41 }
  0xce   : > { %1255 = vmatpush3.bf16.msra.mxu1 %v1644_v32  ;;  %1258 = vmatpush3.bf16.msra.mxu0 %v1618_v13 }
  0xcf   : > { %1259 = vmatprep.subr.bf16.mxu0 %v1469_v1  ;;  %1268 = vmatprep.subr.bf16.mxu1 %v1469_v1 }
  0xd0   : > { %1186 = vmatprep.mubr.msk.f32.mxu0 %vm1470_vm0, %v1471_v12 }
  0xd1   : > { %1168 = vmatmul.mubr.msk.f32.vlgmr.msra.gmra.mrb[2].mxu1 %vm302_vm1, %v1025_v42 }
  0xd2   : > { %1261 = vmatpush3.bf16.msra.mxu0 %v1628_v20  ;;  %1270 = vmatpush3.bf16.msra.mxu1 %v1618_v13 }
  0xd3   : > { %1262 = vmatprep.subr.bf16.mxu0 %v1469_v1  ;;  %1271 = vmatprep.subr.bf16.mxu1 %v1469_v1 }
  0xd4   : > { %1205 = vmatprep.mubr.msk.f32.mxu1 %vm1470_vm0, %v1471_v12  ;;  %vm882_vm0 = vcmp.eq.s32.totalorder %v1651_v34, 0 }
  0xd5   : > { %vm883_vm2 = vmand %vm881_vm15, %vm882_vm0 }
  0xd6   : > { %1264 = vmatpush3.bf16.msra.mxu0 %v1639_v28  ;;  %1273 = vmatpush3.bf16.msra.mxu1 %v1628_v20  ;;  %v1034_v26 = vsel %vm883_vm2, 1.0, %v1471_v12 }
  0xd7   : > { %1265 = vmatprep.subr.bf16.mxu0 %v1469_v1  ;;  %1274 = vmatprep.subr.bf16.mxu1 %v1469_v1 }
  0xda   : > { %1267 = vmatpush3.bf16.msra.mxu0 %v1644_v32  ;;  %1276 = vmatpush3.bf16.msra.mxu1 %v1639_v28 }
  0xdb   : > { %1277 = vmatprep.subr.bf16.mxu1 %v1469_v1 }
  0xdd   : > { %1187 = vmatmul.mubr.msk.f32.vlgmr.msra.gmra.mrb[4].mxu0 %vm302_vm1, %v1028_v45 }
  0xde   : > { %1279 = vmatpush3.bf16.msra.mxu1 %v1644_v32 }
  0xe1   : > { %1206 = vmatmul.mubr.msk.f32.vlgmr.msra.gmra.mrb[4].mxu1 %vm302_vm1, %v1031_v46  ;;  %vm886_vm1 = vcmp.eq.s32.totalorder %v1651_v34, 1 }
  0xe2   : > { %vm887_vm3 = vmand %vm881_vm15, %vm886_vm1 }
 0x190   : > { %v372_v47 = vpop.f32.mrb[0].mxu0 }
 0x191   : > { %v1112_v48 = vpop.f32.mrb[1].mxu0 }
 0x194   : > { %v445_v49 = vpop.f32.mrb[0].mxu1 }
 0x195   : > { %v456_v50 = vmul.f32 %v445_v49, %v372_v47  ;;  %v1131_v51 = vpop.f32.mrb[1].mxu1 }
 0x1a0   : > { %v561_v52 = vpop.f32.mrb[2].mxu0 }
 0x1a1   : > { %v565_v53 = vmul.f32 %v561_v52, %v372_v47  ;;  %v1150_v54 = vpop.f32.mrb[3].mxu0 }
 0x1a3   : > { %566 = vadd.xlane.f32.xlu1 %v565_v53 }
 0x1a4   : > { %v657_v55 = vpop.f32.mrb[2].mxu1 }
 0x1a5   : > { %v661_v56 = vmul.f32 %v657_v55, %v372_v47  ;;  %v1169_v57 = vpop.f32.mrb[3].mxu1 }
 0x1a7   : > { %662 = vadd.xlane.f32.xlu0 %v661_v56  ;;  %457 = vadd.xlane.f32.xlu1 %v456_v50 }
 0x1b0   : > { %v753_v58 = vpop.f32.mrb[4].mxu0 }
 0x1b1   : > { %v757_v59 = vmul.f32 %v753_v58, %v372_v47  ;;  %v1188_v60 = vpop.f32.mrb[5].mxu0 }
 0x1b3   : > { %758 = vadd.xlane.f32.xlu0 %v757_v59 }
 0x1b4   : > { %v849_v61 = vpop.f32.mrb[4].mxu1 }
 0x1b5   : > { %v853_v62 = vmul.f32 %v849_v61, %v372_v47  ;;  %v1207_v63 = vpop.f32.mrb[5].mxu1 }
 0x1b7   : > { %854 = vadd.xlane.f32.xlu0 %v853_v62 }
 0x230   : > { %v567_v0 = vpop.xlane.xlu1 %566 }
 0x231   : > { %v1024_v3 = vclamps-f32 %v567_v0, 6.0 }
 0x233   : > { %v570_v8 = vmul.f32 1.442695, %v1024_v3 }
 0x234   : > { %v663_v1 = vpop.xlane.xlu0 %662  ;;  %v458_v2 = vpop.xlane.xlu1 %457 }
 0x235   : > { %v1027_v4 = vclamps-f32 %v663_v1, 6.0  ;;  %v1021_v5 = vclamps-f32 %v458_v2, 6.0 }
 0x237   : > { %v666_v6 = vmul.f32 1.442695, %v1027_v4  ;;  %v461_v7 = vsub.f32 0.0, %v1021_v5 }
 0x239   : > { %v462_v9 = vmul.f32 1.442695, %v461_v7  ;;  %1349 = vpow2.f32 %v666_v6 }
 0x23b   : > { %1351 = vpow2.f32 %v462_v9 }
 0x23c   : > { %1353 = vpow2.f32 %v570_v8 }
 0x240   : > { %v759_v10 = vpop.xlane.xlu0 %758 }
 0x241   : > { %v1030_v11 = vclamps-f32 %v759_v10, 6.0 }
 0x243   : > { %v762_v13 = vmul.f32 1.442695, %v1030_v11  ;;  %v1350_v14 = vpop.eup %1349 }
 0x244   : > { %v855_v15 = vpop.xlane.xlu0 %854  ;;  %v668_v22 = vadd.f32 1.0, %v1350_v14  ;;  %v671_v37 = vmul.f32 -0.5, %v1350_v14  ;;  %v674_v48 = vand.u32 2147483647, %v1350_v14 }
 0x245   : > { %v1352_v16 = vpop.eup %1351  ;;  %1355 = vpow2.f32 %v762_v13  ;;  %v1033_v17 = vclamps-f32 %v855_v15, 6.0 }
 0x246   : > { %v464_v18 = vadd.f32 1.0, %v1352_v16  ;;  %v1354_v19 = vpop.eup %1353  ;;  %v467_v25 = vmul.f32 -0.5, %v1352_v16  ;;  %v470_v29 = vand.u32 2147483647, %v1352_v16  ;;  %v672_v44 = vadd.f32 1.0, %v671_v37 }
 0x247   : > { %v858_v20 = vmul.f32 1.442695, %v1033_v17  ;;  %v572_v24 = vadd.f32 1.0, %v1354_v19  ;;  %v575_v38 = vmul.f32 -0.5, %v1354_v19  ;;  %v578_v52 = vand.u32 2147483647, %v1354_v19 }
 0x248   : > { %1357 = vlog2.f32 %v464_v18  ;;  %v468_v28 = vadd.f32 1.0, %v467_v25  ;;  %vm471_vm9 = vcmp.lt.f32.partialorder %v470_v29, 0.0004427343  ;;  %v673_v55 = vmul.f32 %v1350_v14, %v672_v44 }
 0x249   : > { %1359 = vpow2.f32 %v858_v20  ;;  %v576_v47 = vadd.f32 1.0, %v575_v38  ;;  %vm675_vm11 = vcmp.lt.f32.partialorder %v674_v48, 0.0004427343  ;;  %vm579_vm12 = vcmp.lt.f32.partialorder %v578_v52, 0.0004427343 }
 0x24a   : > { %1361 = vlog2.f32 %v668_v22  ;;  %v469_v36 = vmul.f32 %v1352_v16, %v468_v28  ;;  %v1035_v28 = vsel %vm887_vm3, 1.0, %v1471_v12 }
 0x24b   : > { %1363 = vlog2.f32 %v572_v24  ;;  %v577_v57 = vmul.f32 %v1354_v19, %v576_v47 }
 0x24f   : > { %v1356_v27 = vpop.eup %1355 }
 0x250   : > { %v764_v30 = vadd.f32 1.0, %v1356_v27  ;;  %v767_v41 = vmul.f32 -0.5, %v1356_v27  ;;  %v770_v53 = vand.u32 2147483647, %v1356_v27 }
 0x252   : > { %v1358_v31 = vpop.eup %1357  ;;  %1365 = vlog2.f32 %v764_v30  ;;  %v768_v50 = vadd.f32 1.0, %v767_v41  ;;  %vm771_vm13 = vcmp.lt.f32.partialorder %v770_v53, 0.0004427343 }
 0x253   : > { %v1360_v32 = vpop.eup %1359  ;;  %v466_v35 = vmul.f32 0.6931472, %v1358_v31 }
 0x254   : > { %v860_v39 = vadd.f32 1.0, %v1360_v32  ;;  %v1362_v42 = vpop.eup %1361  ;;  %v863_v51 = vmul.f32 -0.5, %v1360_v32  ;;  %v769_v60 = vmul.f32 %v1356_v27, %v768_v50  ;;  %v866_v62 = vand.u32 2147483647, %v1360_v32 }
 0x255   : > { %v472_v40 = vsel %vm471_vm9, %v469_v36, %v466_v35  ;;  %v1364_v45 = vpop.eup %1363  ;;  %v670_v49 = vmul.f32 0.6931472, %v1362_v42 }
 0x256   : > { %v473_v43 = vmul.f32 %v1020_v33, %v472_v40  ;;  %1367 = vlog2.f32 %v860_v39  ;;  %v574_v54 = vmul.f32 0.6931472, %v1364_v45  ;;  %v864_v61 = vadd.f32 1.0, %v863_v51 }
 0x257   : > { %v676_v58 = vsel %vm675_vm11, %v673_v55, %v670_v49  ;;  %vm867_vm14 = vcmp.lt.f32.partialorder %v866_v62, 0.0004427343 }
 0x258   : > { %v475_v46 = vsel %vm474_vm10, %v473_v43, 0.0  ;;  %v580_v63 = vsel %vm579_vm12, %v577_v57, %v574_v54  ;;  %v865_v4 = vmul.f32 %v1360_v32, %v864_v61 }
 0x259   : > { %476 = vadd.xlane.f32.xlu1 %v475_v46  ;;  %v677_v2 = vadd.f32 %v676_v58, %v580_v63 }
 0x25c   : > { %v1366_v56 = vpop.eup %1365 }
 0x25d   : > { %v766_v59 = vmul.f32 0.6931472, %v1366_v56 }
 0x25f   : > { %v772_v0 = vsel %vm771_vm13, %v769_v60, %v766_v59 }
 0x260   : > { %v1368_v1 = vpop.eup %1367  ;;  %v773_v5 = vadd.f32 %v772_v0, %v677_v2 }
 0x261   : > { %v862_v3 = vmul.f32 0.6931472, %v1368_v1 }
 0x263   : > { %v868_v6 = vsel %vm867_vm14, %v865_v4, %v862_v3 }
 0x264   : > { %v869_v7 = vadd.f32 %v868_v6, %v773_v5 }
 0x266   : > { %v870_v8 = vmul.f32 %v1020_v33, %v869_v7 }
 0x268   : > { %v871_v9 = vsel %vm474_vm10, %v870_v8, 0.0 }
 0x269   : > { %872 = vadd.xlane.f32.xlu0 %v871_v9 }
 0x2e6   : > { %v477_v10 = vpop.xlane.xlu1 %476 }
 0x2e7   : > { %v478_v11 = vrot.slane %v477_v10, 4 }
 0x2e9   : > { %v479_v13 = vadd.f32 %v478_v11, %v477_v10 }
 0x2eb   : > { %v480_v14 = vrot.slane %v479_v13, 2 }
 0x2ed   : > { %v481_v15 = vadd.f32 %v480_v14, %v479_v13 }
 0x2ef   : > { %v482_v16 = vrot.slane %v481_v15, 1 }
 0x2f1   : > { %v483_v17 = vadd.f32 %v482_v16, %v481_v15 }
 0x2f3   : > { %1280 = vpush %v483_v17 }
 0x2f6   : > { %v873_v18 = vpop.xlane.xlu0 %872 }
 0x2f7   : > { %v874_v19 = vrot.slane %v873_v18, 4 }
 0x2f9   : > { %v875_v20 = vadd.f32 %v874_v19, %v873_v18 }
 0x2fb   : > { %v876_v22 = vrot.slane %v875_v20, 2 }
 0x2fd   : > { %v877_v23 = vadd.f32 %v876_v22, %v875_v20 }
 0x2ff   : > { %v878_v24 = vrot.slane %v877_v23, 1 }
 0x301   : > { %v879_v25 = vadd.f32 %v878_v24, %v877_v23 }
 0x303   : > { %1282 = vpush %v879_v25 }
 0x324   : > { %s1281_s25 = spop %1280 }
 0x325   : > { %v890_v27 = vstv %s1281_s25 }
 0x326   : > { %v891_v21 = vmul.f32 %v1034_v26, %v890_v27 }
 0x334   : > { %s1283_s26 = spop %1282 }
 0x335   : > { %v892_v29 = vstv %s1283_s26 }
 0x336   : > { %v893_v30 = vmul.f32 %v1035_v28, %v892_v29 }
 0x338   : > { %v894_v31 = vadd.f32 %v893_v30, %v891_v21 }
 0x33a   : > { %895 = vst [vmem:[%s256_s7] sm:$0xff] %v894_v31 }
 0x33b   : > { %1410 = shalt.err (!%p1407_p7)
}
 0x33c   : > { %s1411_s15 = scalar_lea.hbm %s1727_s10, 128  ;;  %s1415_s23 = scalar_lea.hbm %s1774_s5, 384 }
 0x33d   : > { %p1412_p8 = scmp.ne.s32.totalorder %s1727_s10, %s1411_s15  ;;  %p1416_p1 = scmp.lt.u32.totalorder %s1727_s10, %s1774_s5 }
 0x33e   : > { %p1417_p0 = scmp.lt.u32.totalorder %s1415_s23, %s1411_s15  ;;  %p1419_p6 = scmp.lt.u32.totalorder %s1411_s15, %s1727_s10 }
 0x33f   : > { %p1413_p11 = pnand %p1412_p8, %p1785_p9 }
 0x340   : > { %p1418_p5 = por %p1417_p0, %p1416_p1 }
 0x341   : > { %p1414_p13 = pneg %p1413_p11 }
 0x342   : > { %p1420_p10 = por %p1419_p6, %p1418_p5 }
 0x344   : > { %p1421_p12 = pnand %p1420_p10, %p1414_p13 }
 0x346   : > { %1424 = shalt.err (!%p1421_p12)
}
 0x347   : > { %1288 = dma.vmem_to_hbm [thread:$0]  (%p1785_p9), %s1729_s30, 128, %s1727_s10, %s897_s11  }
 0x348 PF: > { %p1300_p2 = scmp.ge.s32.totalorder %s1463_s21, 2  ;;  %s922_s6 = sand.u32 1, %s1451_s18  }
 0x349   : > { %p1786_p3 = scmp.ne.s32.totalorder %s1779_s29, 0  ;;  %s923_s7 = scalar_lea.sflag [#allocation4], %s922_s6 }
 0x34b   : > { %p1295_p4 = pnand %p1300_p2, %p1786_p3 }
 0x34d   : > { %1446 = dma.done.wait (!%p1295_p4), %s923_s7, 128  }
 0x34e   : > { %1448 = vsyncadd (!%p1295_p4), %s923_s7, 4294967168  ;;  %p16_p7 = scmp.ge.s32.totalorder %s1531_s24, 5   ;;  %s1787_s18 = smov %s1455_s19 }
 0x34f   : > { %s1788_s19 = smov %s1459_s20  ;;  %s1789_s20 = smov %s1542_s27 }
 0x350   : > { %s1790_s21 = smov %s1531_s24  ;;  %18 = sbr.rel (!%p16_p7) target bundleno = 4 (0x4), region = 86 }
 0x357   :  { %928 = vsyncpa [#allocation3], 1 }
 0x358   :  { %930 = vsyncpa [#allocation3 + $0x1], 1 }
 0x359   :  { %931 = vsyncpa [#allocation4], 1 }
 0x35a   :  { %933 = vsyncpa [#allocation4 + $0x1], 1 }

</bundles_post_ra>
